<compile_context>
chip_gen: v6e
topology: v6e:2x2x1
jax: 0.10.0
libtpu: 0.0.40
codegen_flags: <defaults>
</compile_context>

<pallas_src>
import math
import numpy as np
import jax
import jax.numpy as jnp
from jax import lax
from jax.experimental import pallas as pl
from jax.experimental.pallas import tpu as pltpu


def _time_encoder_kernel(t_ref, wm_ref, b_ref, o_ref):
    # t_ref : (tile_q, F)    folded timestamps (F logical rows per lane-row)
    # wm_ref: (F, F*D)       one-hot-masked tiled weights
    # b_ref : (1, F*D)       tiled bias
    # o_ref : (tile_q, F*D)  lane-dense output block
    #
    # MXU does the lane expansion + scale (exactly one nonzero per column in the
    # K dim => the sum is exact); HIGHEST precision avoids bf16 truncation of
    # large timestamps.  VALU/EUP are left free for the cos polynomial.
    ang = jnp.dot(
        t_ref[...], wm_ref[...],
        preferred_element_type=jnp.float32,
        precision=lax.Precision.HIGHEST,
    )
    ang = ang + b_ref[...]                     # (1, DF) broadcasts over rows (VPU)
    o_ref[...] = jnp.cos(ang).astype(o_ref.dtype)


def time_encoder(timestamps, weight, bias, *, out_dtype=jnp.float32,
                 vmem_budget_bytes=24 << 20, max_out_tile_bytes=4 << 20):
    """timestamps: (batch, seq_len) f32; weight/bias: (time_dim,) f32.
    Returns (batch, seq_len, time_dim) == cos(t[..., None] * w + b)."""
    batch, seq_len = timestamps.shape
    D = weight.shape[0]
    n = batch * seq_len

    # Fold factor: smallest F with (F * D) % 128 == 0 -> lane-dense output for
    # every D (unmasked vst).  Only guard against a pathologically large masked
    # weight matrix (huge odd D), where we fall back to the direct layout.
    F = 128 // math.gcd(D, 128)
    if F * F * D * 4 > (8 << 20):
        F = 1  # TODO(synk): lane-sparse store path only for huge odd time_dim
    DF = F * D

    # Pad only to a multiple of F (no-op when n % F == 0, e.g. whenever D | 128).
    n_pad = pl.cdiv(n, F) * F
    R = n_pad // F                                   # rows in the folded view

    # --- tile_q from a VMEM working-set budget -------------------------------
    # Per tile row: output (DF lanes) + timestamp block padded to 128 lanes,
    # each double-buffered by the pipeline; constant blocks budgeted x2 as well.
    const_bytes = 2 * (F * DF + DF) * 4
    per_row_bytes = 2 * (DF + 128) * 4
    tile_q = max(8, (vmem_budget_bytes - const_bytes) // per_row_bytes)
    tile_q = min(tile_q, max(8, max_out_tile_bytes // (DF * 4)))  # ~4 MiB out tile
    tile_q = max(8, (tile_q // 8) * 8)
    # Guarantee >= 4 grid steps (>= 2 for small inputs) so the "parallel" axis
    # shards across both v7x TensorCores and the pipeline has work to overlap.
    if R >= 32:
        tile_q = min(tile_q, max(8, ((R // 4) // 8) * 8))
    elif R >= 16:
        tile_q = min(tile_q, 8)
    if tile_q > R:
        tile_q = R                                   # tiny input: one full block
    grid = (pl.cdiv(R, tile_q),)

    # Folded inputs (reshapes of contiguous row-major data are free).
    t_flat = timestamps.reshape(-1).astype(jnp.float32)
    if n_pad != n:
        t_flat = jnp.pad(t_flat, (0, n_pad - n))
    t_fold = t_flat.reshape(R, F)

    w32 = weight.astype(jnp.float32)
    b32 = bias.astype(jnp.float32)
    lane = jnp.arange(DF)
    w_tiled = jnp.tile(w32, F)                                     # w[l % D]
    onehot = (lane // D)[None, :] == jnp.arange(F)[:, None]        # (F, DF)
    wmask = jnp.where(onehot, w_tiled[None, :], jnp.float32(0.0))  # (F, DF)
    b_tiled = jnp.tile(b32, F).reshape(1, DF)                      # (1, DF)

    cost = pl.CostEstimate(
        flops=2 * R * F * DF,                  # folded MXU MACs
        transcendentals=R * DF,                # cos
        bytes_accessed=4 * (n_pad + F * DF + DF)
        + R * DF * np.dtype(out_dtype).itemsize,
    )

    out = pl.pallas_call(
        _time_encoder_kernel,
        out_shape=jax.ShapeDtypeStruct((R, DF), out_dtype),
        grid_spec=pltpu.PrefetchScalarGridSpec(
            num_scalar_prefetch=0,
            grid=grid,
            in_specs=[
                pl.BlockSpec((tile_q, F), lambda i: (i, 0)),   # folded timestamps
                pl.BlockSpec((F, DF), lambda i: (0, 0)),       # masked tiled weight
                pl.BlockSpec((1, DF), lambda i: (0, 0)),       # tiled bias
            ],
            out_specs=pl.BlockSpec((tile_q, DF), lambda i: (i, 0)),
        ),
        compiler_params=pltpu.CompilerParams(
            dimension_semantics=("parallel",),
            # Working set budgeted to <= ~24 MiB above: 32 MiB is safe on
            # v5e/v6e (128 MiB physical) and leaves headroom on v7x (64 MiB).
            vmem_limit_bytes=32 * 1024 * 1024,
        ),
        cost_estimate=cost,
    )(t_fold, wmask, b_tiled)

    # Unfold: (R, F*D) -> (R*F, D) is a free reshape of the contiguous buffer;
    # the trailing slice only exists when padding was actually applied.
    out = out.reshape(R * F, D)
    if n_pad != n:
        out = out[:n]
    return out.reshape(batch, seq_len, D)


def make_time_encoder_params(time_dim):
    # Deterministic init matching TimeEncoder.__init__:
    #   weight = 1 / 10 ** linspace(0, 9, time_dim), bias = 0
    w = (1.0 / 10.0 ** np.linspace(0, 9, time_dim, dtype=np.float32)).astype(np.float32)
    b = np.zeros((time_dim,), dtype=np.float32)
    return jnp.asarray(w), jnp.asarray(b)


if __name__ == "__main__":
    batch, seq_len, time_dim = 2, 8, 32

    key = jax.random.PRNGKey(0)
    timestamps = jax.random.uniform(key, (batch, seq_len), dtype=jnp.float32,
                                    minval=0.0, maxval=1000.0)
    weight, bias = make_time_encoder_params(time_dim)

    out = jax.block_until_ready(time_encoder(timestamps, weight, bias))

    # Reference (same math as torch.cos(Linear(1, D)(t[..., None]))).
    ref = jnp.cos(timestamps[..., None] * weight[None, None, :] + bias[None, None, :])
    assert out.shape == (batch, seq_len, time_dim)
    # MXU HIGHEST precision (bf16x6) reproduces the f32 product to within a few
    # ulps; at |angle| ~ 1e3 one ulp of the angle is ~6e-5, so the cos output can
    # differ from the pure-f32 VPU reference by ~1e-4.  Validate at that level.
    np.testing.assert_allclose(np.asarray(out), np.asarray(ref), rtol=1e-4, atol=5e-4)

    print("KERNEL_OK")
</pallas_src>

<mosaic_0001>
module attributes {stable_mosaic.version = 11 : i64} {
  func.func @_time_encoder_kernel(%arg0: i32, %arg1: memref<4x4xf32, #tpu.memory_space<vmem>>, %arg2: memref<4x128xf32, #tpu.memory_space<vmem>>, %arg3: memref<1x128xf32, #tpu.memory_space<vmem>>, %arg4: memref<4x128xf32, #tpu.memory_space<vmem>>) attributes {dimension_semantics = [#tpu.dimension_semantics<parallel>], iteration_bounds = array<i64: 1>, scalar_prefetch = 0 : i64, scratch_operands = 0 : i64, tpu.core_type = #tpu.core_type<tc>, window_params = [{transform_indices = @transform_0, window_bounds = array<i64: 4, 4>}, {pipeline_mode = #tpu.pipeline_mode<synchronous>, transform_indices = @transform_1, window_bounds = array<i64: 4, 128>}, {pipeline_mode = #tpu.pipeline_mode<synchronous>, transform_indices = @transform_2, window_bounds = array<i64: 1, 128>}, {transform_indices = @transform_3, window_bounds = array<i64: 4, 128>}]} {
    %c0 = arith.constant 0 : index
    %c0_0 = arith.constant 0 : index
    %0 = vector.load %arg1[%c0, %c0_0] : memref<4x4xf32, #tpu.memory_space<vmem>>, vector<4x4xf32>
    %c0_1 = arith.constant 0 : index
    %c0_2 = arith.constant 0 : index
    %1 = vector.load %arg2[%c0_1, %c0_2] : memref<4x128xf32, #tpu.memory_space<vmem>>, vector<4x128xf32>
    %cst = arith.constant dense<0.000000e+00> : vector<4x128xf32>
    %2 = tpu.matmul %0, %1, %cst {dimension_numbers = #tpu.dot_dimension_numbers<[1], [0], [0], [1], [0, 0, 1, 1], [], []>, precision = #tpu.contract_precision<fp32>} : vector<4x4xf32>, vector<4x128xf32>, vector<4x128xf32> -> vector<4x128xf32>
    %c0_3 = arith.constant 0 : index
    %c0_4 = arith.constant 0 : index
    %3 = vector.load %arg3[%c0_3, %c0_4] : memref<1x128xf32, #tpu.memory_space<vmem>>, vector<1x128xf32>
    %4 = vector.broadcast %3 : vector<1x128xf32> to vector<4x128xf32>
    %5 = arith.addf %2, %4 : vector<4x128xf32>
    %6 = math.cos %5 : vector<4x128xf32>
    %c0_5 = arith.constant 0 : index
    %c0_6 = arith.constant 0 : index
    %7 = vector.load %arg4[%c0_5, %c0_6] : memref<4x128xf32, #tpu.memory_space<vmem>>, vector<4x128xf32>
    tpu.vector_store %arg4[%c0_5, %c0_6], %6 {strides = array<i32>} : memref<4x128xf32, #tpu.memory_space<vmem>>, vector<4x128xf32>,
    return
  }
  func.func @transform_0(%arg0: i32) -> (i32, i32) {
    %c0_i32 = arith.constant 0 : i32
    %c0_i32_0 = arith.constant 0 : i32
    return %arg0, %c0_i32 : i32, i32
  }
  func.func @transform_1(%arg0: i32) -> (i32, i32) {
    %c0_i32 = arith.constant 0 : i32
    %c0_i32_0 = arith.constant 0 : i32
    %c0_i32_1 = arith.constant 0 : i32
    return %c0_i32, %c0_i32_0 : i32, i32
  }
  func.func @transform_2(%arg0: i32) -> (i32, i32) {
    %c0_i32 = arith.constant 0 : i32
    %c0_i32_0 = arith.constant 0 : i32
    %c0_i32_1 = arith.constant 0 : i32
    return %c0_i32, %c0_i32_0 : i32, i32
  }
  func.func @transform_3(%arg0: i32) -> (i32, i32) {
    %c0_i32 = arith.constant 0 : i32
    %c0_i32_0 = arith.constant 0 : i32
    return %arg0, %c0_i32 : i32, i32
  }
}

</mosaic_0001>

<bundles_post_ra>
// kernel: tpu_custom_call.1
= control target key start
LH: loop header
LB: loop body
LE: loop exit
PB: predicated region body
PF: predicated region fallthrough
CT: control target
= control target key end

     0   :  { %8 = vsyncpa [#allocation3], 0  ;;  %s824_s0 = inlined_call_operand.hbm [shape: f32[4,4], index: 0, kind: input, shape index: {}]   ;;  %s825_s1 = inlined_call_operand.hbm [shape: f32[4,128], index: 1, kind: input, shape index: {}]   ;;  %s826_s2 = inlined_call_operand.vmem [shape: f32[1,128], index: 2, kind: input, shape index: {}]   ;;  %s827_s3 = inlined_call_operand.hbm [shape: f32[4,128], index: 3, kind: output, shape index: {}]  }
   0x1   :  { %9 = vsyncpa [#allocation6], 0 }
   0x2   :  { %10 = vsyncpa [#allocation4], 0  ;;  %s754_s12 = smov [#allocation2]   ;;  %s755_s14 = smov [#allocation5]  }
   0x3   :  { %s17_s13 = sshll.u32 %s754_s12, 4  ;;  %s27_s15 = sshll.u32 %s755_s14, 4  ;;  %s18_s13 = int_to_ptr.vmem [resolvable:$true] %s17_s13  ;;  %s28_s15 = int_to_ptr.vmem [resolvable:$true] %s27_s15 }
   0x4   :  { %s696_s16 = scalar_lea.vmem %s18_s13, 64  ;;  %p701_p1 = scmp.lt.s32.totalorder %s18_s13, %s18_s13 }
   0x5   :  { %p697_p0 = scmp.ne.s32.totalorder %s18_s13, %s696_s16  ;;  %p702_p2 = scmp.lt.s32.totalorder %s696_s16, %s696_s16 }
   0x7   :  { %p703_p3 = por %p702_p2, %p701_p1 }
   0x9   :  { %p704_p4 = pnand %p703_p3, %p697_p0 }
   0xb   :  { %707 = shalt.err (!%p704_p4)
}
   0xc   :  { %20 = dma.hbm_to_vmem [thread:$0]  %s824_s0, 64, %s18_s13, [#allocation3]  }
   0xd   :  { %s716_s19 = scalar_lea.vmem %s28_s15, 64  ;;  %p721_p6 = scmp.lt.s32.totalorder %s28_s15, %s28_s15 }
   0xe   :  { %p717_p5 = scmp.ne.s32.totalorder %s28_s15, %s716_s19  ;;  %p722_p7 = scmp.lt.s32.totalorder %s716_s19, %s716_s19 }
  0x10   :  { %p723_p8 = por %p722_p7, %p721_p6 }
  0x12   :  { %p724_p9 = pnand %p723_p8, %p717_p5 }
  0x14   :  { %727 = shalt.err (!%p724_p9)
}
  0x15   :  { %30 = dma.hbm_to_vmem [thread:$0]  %s825_s1, 64, %s28_s15, [#allocation6]  }
  0x16   :  { %748 = dma.done.wait [#allocation3], 64  }
  0x17   :  { %749 = vsyncadd [#allocation3], 4294967232 }
  0x18   :  { %750 = dma.done.wait [#allocation6], 64  }
  0x19   :  { %751 = vsyncadd [#allocation6], 4294967232  ;;  %v756_v0 = vmov 0.0   ;;  %vm757_vm0 = vmmov 0   ;;  %vm52_vm1 = vcmask 1043456   ;;  %vm48_vm2 = vcmask 31744  }
  0x1a   :  { %639 = vmatprep.subr.mxu0 %v756_v0  ;;  %641 = vmatprep.mubr.msk.f32.mxu0 %vm757_vm0, %v756_v0  ;;  %v40_v1 = vld [vmem:[#allocation5] sm:$0xf]  ;;  %v39_v2 = vld [vmem:[#allocation2] sm:$0xf]  ;;  %v758_v44 = vmov 683565275  }
  0x1b   :  { %644 = vmatprep.subr.mxu1 %v756_v0  ;;  %646 = vmatprep.mubr.msk.f32.mxu1 %vm757_vm0, %v756_v0  ;;  %v54_v3 = vsel %vm52_vm1, %v40_v1, 0  ;;  %v50_v4 = vsel %vm48_vm2, %v39_v2, 0  ;;  %v622_v15 = vld [vmem:[%s826_s2] ss:$0 sm:$0xff]  ;;  %v759_v46 = vmov 2475754826  }
  0x1c   :  { %v87_v5 = vand.u32 4294901760, %v54_v3  ;;  %v122_v6 = vand.u32 4294901760, %v50_v4  ;;  %v760_v49 = vmov 2131351028   ;;  %v761_v52 = vmov 2102212464  }
  0x1d   :  { %v762_v55 = vmov 920167782   ;;  %v763_v58 = vmov 1326507024   ;;  %s764_s2 = smov [#allocation7]  }
  0x1e   :  { %640 = vmatpush3.msra.mxu0 %v87_v5  ;;  %v123_v7 = vsub.f32 %v50_v4, %v122_v6  ;;  %v164_v8 = vsub.f32 %v54_v3, %v87_v5  ;;  %s612_s22 = sshll.u32 %s764_s2, 4  ;;  %s613_s22 = int_to_ptr.vmem [resolvable:$true] %s612_s22 }
  0x1f   :  { %649 = vmatprep.subr.mxu0 %v756_v0  ;;  %s728_s23 = scalar_lea.vmem %s613_s22, 64  ;;  %p733_p11 = scmp.lt.s32.totalorder %s613_s22, %s613_s22 }
  0x20   :  { %v124_v9 = vand.u32 4294901760, %v123_v7  ;;  %v165_v10 = vand.u32 4294901760, %v164_v8  ;;  %p729_p10 = scmp.ne.s32.totalorder %s613_s22, %s728_s23  ;;  %p734_p12 = scmp.lt.s32.totalorder %s728_s23, %s728_s23 }
  0x22   :  { %v125_v11 = vsub.f32 %v123_v7, %v124_v9  ;;  %v166_v12 = vsub.f32 %v164_v8, %v165_v10  ;;  %p735_p13 = por %p734_p12, %p733_p11 }
  0x24   :  { %v126_v13 = vand.u32 4294901760, %v125_v11  ;;  %v167_v14 = vand.u32 4294901760, %v166_v12  ;;  %p736_p0 = pnand %p735_p13, %p729_p10 }
  0x26   :  { %642 = vmatmul.mubr.f32.vlgmr.msra.gmra.mxu0 %v126_v13  ;;  %645 = vmatpush3.msra.mxu1 %v167_v14 }
  0x27   :  { %650 = vmatpush3.msra.mxu0 %v164_v8  ;;  %647 = vmatmul.mubr.f32.vlgmr.msra.gmra.mxu1 %v122_v6 }
  0x28   :  { %654 = vmatprep.subr.mxu1 %v756_v0  ;;  %651 = vmatprep.mubr.msk.f32.mxu0 %vm757_vm0, %v756_v0 }
  0x29   :  { %655 = vmatpush3.msra.mxu1 %v87_v5  ;;  %659 = vmatprep.subr.mxu0 %v756_v0 }
  0x2a   :  { %652 = vmatmul.mubr.f32.vlgmr.msra.gmra.mxu0 %v123_v7  ;;  %656 = vmatprep.mubr.msk.f32.mxu1 %vm757_vm0, %v756_v0 }
  0x2b   :  { %660 = vmatpush3.msra.mxu0 %v165_v10  ;;  %657 = vmatmul.mubr.f32.vlgmr.msra.gmra.mxu1 %v124_v9 }
  0x2c   :  { %664 = vmatprep.subr.mxu1 %v756_v0  ;;  %661 = vmatprep.mubr.msk.f32.mxu0 %vm757_vm0, %v756_v0 }
  0x2d   :  { %665 = vmatpush3.msra.mxu1 %v87_v5  ;;  %666 = vmatprep.mubr.msk.f32.mxu1 %vm757_vm0, %v756_v0 }
  0x2e   :  { %662 = vmatmul.mubr.f32.vlgmr.msra.gmra.mxu0 %v122_v6 }
  0x2f   :  { %667 = vmatmul.mubr.f32.vlgmr.msra.gmra.mxu1 %v122_v6 }
  0xe6   :  { %v128_v16 = vpop.f32.mrf.mxu0 }
  0xe7   :  { %v129_v17 = vadd.f32 %v622_v15, %v128_v16  ;;  %v204_v18 = vpop.f32.mrf.mxu1 }
  0xe8   :  { %v643_v19 = vpop.f32.mrf.mxu0 }
  0xe9   :  { %v205_v20 = vadd.f32 %v204_v18, %v129_v17  ;;  %v648_v21 = vpop.f32.mrf.mxu1 }
  0xea   :  { %v278_v22 = vpop.f32.mrf.mxu0 }
  0xeb   :  { %v279_v23 = vadd.f32 %v278_v22, %v205_v20  ;;  %v352_v24 = vpop.f32.mrf.mxu1 }
  0xec   :  { %v653_v25 = vpop.f32.mrf.mxu0 }
  0xed   :  { %v353_v26 = vadd.f32 %v352_v24, %v279_v23  ;;  %v658_v27 = vpop.f32.mrf.mxu1 }
  0xee   :  { %v426_v28 = vpop.f32.mrf.mxu0 }
  0xef   :  { %v427_v29 = vadd.f32 %v426_v28, %v353_v26  ;;  %v498_v30 = vpop.f32.mrf.mxu1 }
  0xf0   :  { %v663_v31 = vpop.f32.mrf.mxu0 }
  0xf1   :  { %v800_v32 = vadd.f32 %v498_v30, %v427_v29  ;;  %v668_v33 = vpop.f32.mrf.mxu1 }
  0xf3   :  { %v505_v34 = vand.u32 2139095040, %v800_v32  ;;  %v502_v38 = vand.u32 2147483647, %v800_v32  ;;  %vm504_vm10 = vcmp.lt.s32.totalorder %v800_v32, 0  ;;  %vm594_vm15 = vweird.f32 %v800_v32 }
  0xf5   :  { %v506_v35 = vshrl.u32 %v505_v34, 23  ;;  %v509_v41 = vand.u32 8388607, %v502_v38  ;;  %vm503_vm11 = vcmp.le.f32.partialorder %v502_v38, 0.7853982 }
  0xf7   :  { %v623_v36 = vadd.s32 4294967169, %v506_v35  ;;  %v510_v60 = vor.u32 8388608, %v509_v41 }
  0xf9   :  { %v512_v37 = vadd.s32 1, %v623_v36  ;;  %v550_v10 = vshll.u32 %v510_v60, 8 }
  0xfb   :  { %vm513_vm3 = vcmp.gt.s32.totalorder %v512_v37, 0 }
  0xfc   :  { %v514_v39 = vsel %vm513_vm3, %v512_v37, 0 }
  0xfd   :  { %v516_v40 = vand.u32 31, %v514_v39  ;;  %v515_v43 = vshrl.u32 %v514_v39, 5 }
  0xff   :  { %v517_v42 = vsub.s32 32, %v516_v40  ;;  %v519_v45 = vshll.u32 %v758_v44, %v516_v40  ;;  %v522_v47 = vshll.u32 %v759_v46, %v516_v40  ;;  %v525_v51 = vshll.u32 %v760_v49, %v516_v40 }
 0x100   :  { %v528_v54 = vshll.u32 %v761_v52, %v516_v40  ;;  %v531_v57 = vshll.u32 %v762_v55, %v516_v40  ;;  %vm534_vm4 = vcmp.lt.s32.totalorder %v515_v43, 1  ;;  %vm537_vm5 = vcmp.lt.s32.totalorder %v515_v43, 4 }
 0x101   :  { %v520_v48 = vshrl.u32 %v759_v46, %v517_v42  ;;  %v523_v50 = vshrl.u32 %v760_v49, %v517_v42  ;;  %v526_v53 = vshrl.u32 %v761_v52, %v517_v42  ;;  %v529_v56 = vshrl.u32 %v762_v55, %v517_v42 }
 0x102   :  { %v532_v59 = vshrl.u32 %v763_v58, %v517_v42  ;;  %v518_v5 = vshrl.u32 %v758_v44, %v517_v42  ;;  %vm536_vm6 = vcmp.lt.s32.totalorder %v515_v43, 3  ;;  %vm535_vm7 = vcmp.lt.s32.totalorder %v515_v43, 2 }
 0x103   :  { %v521_v61 = vor.u32 %v520_v48, %v519_v45  ;;  %v524_v62 = vor.u32 %v523_v50, %v522_v47  ;;  %v527_v63 = vor.u32 %v526_v53, %v525_v51  ;;  %v530_v0 = vor.u32 %v529_v56, %v528_v54 }
 0x104   :  { %v533_v1 = vor.u32 %v532_v59, %v531_v57 }
 0x105   :  { %v539_v2 = vsel %vm537_vm5, %v527_v63, 2102212464  ;;  %v542_v3 = vsel %vm534_vm4, %v521_v61, %v524_v62  ;;  %v546_v4 = vsel %vm534_vm4, %v524_v62, %v527_v63  ;;  %v543_v6 = vsel %vm537_vm5, %v530_v0, 920167782 }
 0x106   :  { %v547_v7 = vsel %vm537_vm5, %v533_v1, 1326507024  ;;  %v544_v8 = vsel %vm536_vm6, %v527_v63, %v543_v6  ;;  %v538_v11 = vsel %vm534_vm4, %v518_v5, %v521_v61  ;;  %v540_v12 = vsel %vm536_vm6, %v524_v62, %v539_v2 }
 0x107   :  { %v548_v9 = vsel %vm536_vm6, %v530_v0, %v547_v7  ;;  %v545_v13 = vsel %vm535_vm7, %v542_v3, %v544_v8  ;;  %v541_v19 = vsel %vm535_vm7, %v538_v11, %v540_v12 }
 0x108   :  { %v549_v14 = vsel %vm535_vm7, %v546_v4, %v548_v9  ;;  %v809_v17 = vmul.u32.u64.low %v550_v10, %v545_v13  ;;  %v810_v18 = vmul.u32.u64.high %v550_v10, %v545_v13, %v809_v17  ;;  %v557_v21 = vmul.u32 %v550_v10, %v541_v19 }
 0x109   :  { %v806_v15 = vmul.u32.u64.low %v550_v10, %v549_v14  ;;  %v807_v16 = vmul.u32.u64.high %v550_v10, %v549_v14, %v806_v15 }
 0x10a   :  { %v560_v20 = vadd.s32 1, %v810_v18 }
 0x10b   :  { %vm559_vm8 = vc.u32 %v807_v16, %v809_v17  ;;  %v558_v34 = vadd.s32 %v809_v17, %v807_v16 }
 0x10c   :  { %v561_v22 = vsel %vm559_vm8, %v560_v20, %v810_v18 }
 0x10d   :  { %v562_v23 = vadd.s32 %v561_v22, %v557_v21 }
 0x10f   :  { %v563_v24 = vadd.s32 536870912, %v562_v23 }
 0x111   :  { %v564_v25 = vshrl.u32 %v563_v24, 30 }
 0x113   :  { %v565_v26 = vshll.u32 %v564_v25, 30  ;;  %v588_v50 = vsub.s32 4, %v564_v25 }
 0x115   :  { %v566_v27 = vsub.s32 %v562_v23, %v565_v26  ;;  %v589_v51 = vsel %vm504_vm10, %v588_v50, %v564_v25 }
 0x116   :  { %v591_v52 = vsel %vm503_vm11, 0, %v589_v51 }
 0x117   :  { %v568_v28 = vsub.s32 0, %v566_v27  ;;  %v595_v53 = vand.u32 3, %v591_v52 }
 0x119   :  { %v624_v29 = vmin.u32 %v568_v28, %v566_v27  ;;  %vm600_vm12 = vcmp.eq.s32.totalorder %v595_v53, 2  ;;  %vm597_vm13 = vcmp.eq.s32.totalorder %v595_v53, 0  ;;  %vm596_vm14 = vcmp.lt.s32.totalorder %v595_v53, 2 }
 0x11b   :  { %v570_v30 = vclz %v624_v29 }
 0x11d   :  { %v625_v31 = vadd.s32 4294967294, %v570_v30 }
 0x11f   :  { %vm626_vm9 = vcmp.lt.s32.totalorder %v625_v31, 0 }
 0x120   :  { %v573_v33 = vsel %vm626_vm9, 0, %v625_v31 }
 0x121   :  { %v574_v35 = vsub.s32 32, %v573_v33  ;;  %v578_v36 = vsub.s32 4294967266, %v573_v33  ;;  %v575_v37 = vshll.u32 %v566_v27, %v573_v33 }
 0x123   :  { %v576_v39 = vshrl.u32 %v558_v34, %v574_v35  ;;  %v579_v40 = vadd.s32 127, %v578_v36 }
 0x125   :  { %v577_v41 = vor.u32 %v576_v39, %v575_v37  ;;  %v580_v42 = vshll.u32 %v579_v40, 23 }
 0x127   :  { %v581_v43 = vor.u32 4788187, %v580_v42  ;;  %v584_v45 = vcvt.s32.f32 %v577_v41 }
 0x129   :  { %v582_v44 = vand.u32 2147483647, %v581_v43 }
 0x12b   :  { %v585_v46 = vmul.f32 %v584_v45, %v582_v44 }
 0x12d   :  { %v586_v47 = vxor.u32 2147483648, %v585_v46 }
 0x12f   :  { %v587_v48 = vsel %vm504_vm10, %v586_v47, %v585_v46 }
 0x130   :  { %v590_v49 = vsel %vm503_vm11, %v800_v32, %v587_v48 }
 0x131   :  { %684 = vcosq.f32 %v590_v49 }
 0x132   :  { %686 = vsinq.f32 %v590_v49 }
 0x13e   :  { %v685_v54 = vpop.eup %684 }
 0x13f   :  { %v687_v55 = vpop.eup %686  ;;  %v601_v56 = vxor.u32 2147483648, %v685_v54 }
 0x140   :  { %v598_v57 = vxor.u32 2147483648, %v687_v55 }
 0x141   :  { %v602_v58 = vsel %vm600_vm12, %v601_v56, %v687_v55 }
 0x142   :  { %v599_v59 = vsel %vm597_vm13, %v685_v54, %v598_v57 }
 0x143   :  { %v603_v38 = vsel %vm596_vm14, %v599_v59, %v602_v58 }
 0x144   :  { %v604_v60 = vsel %vm594_vm15, nan, %v603_v38 }
 0x145   :  { %605 = vst [vmem:[#allocation7] sm:$0xf] %v604_v60 }
 0x146   :  { %739 = shalt.err (!%p736_p0)
}
 0x147   :  { %615 = dma.vmem_to_hbm [thread:$0]  %s613_s22, 64, %s827_s3, [#allocation4]  }
 0x148   :  { %752 = dma.done.wait [#allocation4], 64  }
 0x149   :  { %753 = vsyncadd [#allocation4], 4294967232 }
 0x14a   :  { %619 = vsyncpa [#allocation3], 1 }
 0x14b   :  { %620 = vsyncpa [#allocation6], 1 }
 0x14c   :  { %621 = vsyncpa [#allocation4], 1 }

</bundles_post_ra>
